<compile_context>
chip_gen: v7x
topology: tpu7x:2x2x1
jax: 0.10.0
libtpu: 0.0.40
codegen_flags: <defaults>
</compile_context>

<pallas_src>
import functools

import jax
import jax.numpy as jnp
from jax.experimental import pallas as pl
from jax.experimental.pallas import tpu as pltpu


def _conv_bn_relu_kernel(x_ref, w_ref, shift_ref, o_ref, *, kh_taps, block_h):
    """One (batch, output-row-block) tile per grid step.

    x_ref:     (Hp, Wo, KW*Cin)        width-unfolded padded NHWC input (bf16),
                                       whole image for this batch element
                                       (constant block index -> VMEM resident).
    w_ref:     (KH, KW*Cin, Cout_p)    conv weights with BN scale folded in (bf16).
    shift_ref: (1, Cout_p)             folded BN shift = beta + (b - mean)*scale (f32).
    o_ref:     (block_h, Wo, Cout_p)   output tile (bf16).
    """
    _, wo, cout_p = o_ref.shape
    kdim = w_ref.shape[1]                      # KW * Cin
    rows = block_h * wo                        # kept a multiple of 16 by the wrapper

    h_blk = pl.program_id(1)
    row0 = pl.multiple_of(h_blk * block_h, block_h)

    # kh = 0 initialises the register-resident accumulator (no zero-fill).
    slab0 = x_ref[pl.ds(row0, block_h), :, :].reshape(rows, kdim)
    acc = jnp.dot(slab0, w_ref[0], preferred_element_type=jnp.float32)
    # Remaining KH-1 shifted-slab matmuls: slice only along the cheap outer H
    # axis; contraction dim is KW*Cin, output dim is lane-dense Cout_p.
    for kh in range(1, kh_taps):
        slab = x_ref[pl.ds(row0 + kh, block_h), :, :].reshape(rows, kdim)
        acc = acc + jnp.dot(slab, w_ref[kh], preferred_element_type=jnp.float32)

    # BN scale already folded into the weights: epilogue is shift + ReLU in f32,
    # bf16 cast only at the store.
    y = jnp.maximum(acc + shift_ref[...], 0.0)
    o_ref[...] = y.reshape(block_h, wo, cout_p).astype(o_ref.dtype)


def _pick_block_h(ho, wo, n_batch, cout_p, *,
                  acc_budget_bytes=128 * 1024, min_grid_steps=4):
    """Pick block_h (divisor of Ho) such that:
       - the f32 accumulator (block_h*Wo*Cout_p*4 B) stays <= ~half the vreg file,
       - the grid has >= min_grid_steps steps (keeps both v7x TensorCores busy),
       - block_h*Wo is a multiple of the bf16 sublane tile (16) when possible,
         so the in-kernel reshape is layout-free."""
    max_rows = max(wo, acc_budget_bytes // (4 * cout_p))
    divisors = [d for d in range(1, ho + 1) if ho % d == 0]

    def ok_rows(d):
        return d * wo <= max_rows

    def ok_steps(d):
        return n_batch * (ho // d) >= min_grid_steps

    def aligned(d):
        return (d * wo) % 16 == 0

    for pred in ((lambda d: ok_rows(d) and ok_steps(d) and aligned(d)),
                 (lambda d: ok_rows(d) and ok_steps(d)),
                 ok_rows):
        cands = [d for d in divisors if pred(d)]
        if cands:
            return max(cands)
    return 1


def basic_conv2d(x_nchw, weight_oihw, conv_bias, gamma, beta,
                 running_mean, running_var, *, padding=1, eps=1e-5,
                 block_h=None):
    """Pallas implementation of BasicConv2d.forward (stride=1, eval-mode BN)."""
    # TODO(synk): stride != 1 and training-mode BatchNorm (batch statistics over
    # N,H,W) are not implemented; eval/running-stats semantics are used.
    N, Cin, H, W = x_nchw.shape
    Cout, _, KH, KW = weight_oihw.shape
    Hp, Wp = H + 2 * padding, W + 2 * padding
    Ho, Wo = Hp - KH + 1, Wp - KW + 1
    Cout_p = ((Cout + 127) // 128) * 128          # lane-dense output channels

    if block_h is None:
        block_h = _pick_block_h(Ho, Wo, N, Cout_p)
    assert Ho % block_h == 0, (Ho, block_h)

    # ---- wrapper glue (layout / BN fold), kept outside the kernel ----------
    # TODO(synk): for small-Cin stem layers the KW unfold inflates input HBM
    # bytes ~KW x; a production version should pass the padded NHWC image and
    # do the KW taps in-kernel, or fuse this layout pass into the producer.
    x = jnp.transpose(x_nchw, (0, 2, 3, 1)).astype(jnp.bfloat16)      # NHWC bf16
    x = jnp.pad(x, ((0, 0), (padding, padding), (padding, padding), (0, 0)))
    # Width unfold: x_unf[n, h, w, kw*Cin + c] = x_pad[n, h, w + kw, c]
    x_unf = jnp.concatenate(
        [x[:, :, kw:kw + Wo, :] for kw in range(KW)], axis=-1)        # (N,Hp,Wo,KW*Cin)

    # Fold BN: scale goes into the weights, shift stays as a per-channel add.
    scale = gamma / jnp.sqrt(running_var + eps)                       # (Cout,)
    shift = beta + (conv_bias - running_mean) * scale                 # (Cout,)
    w = jnp.transpose(weight_oihw, (2, 3, 1, 0)).reshape(KH, KW * Cin, Cout)
    w = w * scale[None, None, :]
    w = jnp.pad(w, ((0, 0), (0, 0), (0, Cout_p - Cout))).astype(jnp.bfloat16)
    shift = jnp.pad(shift, (0, Cout_p - Cout)).reshape(1, Cout_p).astype(jnp.float32)

    kernel = functools.partial(_conv_bn_relu_kernel, kh_taps=KH, block_h=block_h)

    # VMEM budget from the actual block sizes (double-buffered in/out blocks +
    # resident weights/shift), clamped to fit v7x's 64 MiB/TC.
    in_blk_bytes = Hp * Wo * KW * Cin * 2
    out_blk_bytes = block_h * Wo * Cout_p * 2
    w_bytes = KH * KW * Cin * Cout_p * 2 + Cout_p * 4
    vmem_limit = int(min(max(2 * (in_blk_bytes + out_blk_bytes) + 2 * w_bytes
                             + (1 << 20), 8 << 20), 48 << 20))

    out_nhwc = pl.pallas_call(
        kernel,
        out_shape=jax.ShapeDtypeStruct((N, Ho, Wo, Cout_p), jnp.bfloat16),
        grid_spec=pltpu.PrefetchScalarGridSpec(
            num_scalar_prefetch=0,
            grid=(N, Ho // block_h),
            in_specs=[
                # Whole (padded, unfolded) image per batch element; block index
                # constant along the row-block axis -> stays resident in VMEM.
                pl.BlockSpec((None, Hp, Wo, KW * Cin), lambda n, h: (n, 0, 0, 0)),
                # Weights / shift: constant block index -> resident.
                pl.BlockSpec((KH, KW * Cin, Cout_p), lambda n, h: (0, 0, 0)),
                pl.BlockSpec((1, Cout_p), lambda n, h: (0, 0)),
            ],
            out_specs=pl.BlockSpec((None, block_h, Wo, Cout_p),
                                   lambda n, h: (n, h, 0, 0)),
        ),
        compiler_params=pltpu.CompilerParams(
            dimension_semantics=("parallel", "parallel"),
            vmem_limit_bytes=vmem_limit,
        ),
    )(x_unf, w, shift)

    # TODO(synk): in a full network keep NHWC / padded-Cout / bf16 for the next
    # layer; this slice + transpose + f32 cast exists only to match the PyTorch
    # NCHW float32 output contract.
    return jnp.transpose(out_nhwc[..., :Cout], (0, 3, 1, 2)).astype(jnp.float32)


def _reference(x, w, b, gamma, beta, mean, var, *, padding=1, eps=1e-5):
    """Pure-JAX reference (eval-mode BN) for verification."""
    conv = jax.lax.conv_general_dilated(
        x, w, window_strides=(1, 1),
        padding=((padding, padding), (padding, padding)),
        dimension_numbers=("NCHW", "OIHW", "NCHW"),
        precision=jax.lax.Precision.HIGHEST)
    conv = conv + b.reshape(1, -1, 1, 1)
    y = (conv - mean.reshape(1, -1, 1, 1)) / jnp.sqrt(
        var.reshape(1, -1, 1, 1) + eps)
    y = y * gamma.reshape(1, -1, 1, 1) + beta.reshape(1, -1, 1, 1)
    return jnp.maximum(y, 0.0)


if __name__ == "__main__":
    # BasicConv2d(in_channels=4, out_channels=8, kernel_size=3, padding=1)
    N, Cin, H, W = 2, 4, 16, 16
    Cout, KH, KW = 8, 3, 3

    key = jax.random.PRNGKey(0)
    kx, kw_, kb, kg, kbt, km, kv = jax.random.split(key, 7)

    x = jax.random.normal(kx, (N, Cin, H, W), jnp.float32)
    weight = 0.1 * jax.random.normal(kw_, (Cout, Cin, KH, KW), jnp.float32)
    conv_bias = 0.1 * jax.random.normal(kb, (Cout,), jnp.float32)
    gamma = 1.0 + 0.1 * jax.random.normal(kg, (Cout,), jnp.float32)
    beta = 0.1 * jax.random.normal(kbt, (Cout,), jnp.float32)
    running_mean = 0.1 * jax.random.normal(km, (Cout,), jnp.float32)
    running_var = jnp.abs(jax.random.normal(kv, (Cout,), jnp.float32)) + 0.5

    out = basic_conv2d(x, weight, conv_bias, gamma, beta,
                       running_mean, running_var, padding=1)
    out = jax.block_until_ready(out)
    assert out.shape == (N, Cout, H, W), out.shape

    # The kernel feeds the MXU bf16 operands (BN scale folded into the weights)
    # and stores bf16; compare against a reference with bf16-rounded conv inputs
    # and a tolerance covering the extra bf16 rounding of scale-fold + store.
    x_bf = x.astype(jnp.bfloat16).astype(jnp.float32)
    w_bf = weight.astype(jnp.bfloat16).astype(jnp.float32)
    ref = _reference(x_bf, w_bf, conv_bias, gamma, beta,
                     running_mean, running_var, padding=1)
    max_err = float(jnp.max(jnp.abs(out - ref)))
    assert jnp.allclose(out, ref, atol=5e-2, rtol=5e-2), max_err

    print("KERNEL_OK")
</pallas_src>

<mosaic_0001>
module attributes {stable_mosaic.version = 11 : i64} {
  func.func @_conv_bn_relu_kernel(%arg0: i32, %arg1: i32, %arg2: memref<1x18x16x12xbf16, #tpu.memory_space<vmem>>, %arg3: memref<3x12x128xbf16, #tpu.memory_space<vmem>>, %arg4: memref<1x128xf32, #tpu.memory_space<vmem>>, %arg5: memref<1x8x16x128xbf16, #tpu.memory_space<vmem>>) attributes {dimension_semantics = [#tpu.dimension_semantics<parallel>, #tpu.dimension_semantics<parallel>], iteration_bounds = array<i64: 2, 2>, scalar_prefetch = 0 : i64, scratch_operands = 0 : i64, tpu.core_type = #tpu.core_type<tc>, window_params = [{transform_indices = @transform_0, window_bounds = array<i64: 1, 18, 16, 12>}, {pipeline_mode = #tpu.pipeline_mode<synchronous>, transform_indices = @transform_1, window_bounds = array<i64: 3, 12, 128>}, {pipeline_mode = #tpu.pipeline_mode<synchronous>, transform_indices = @transform_2, window_bounds = array<i64: 1, 128>}, {transform_indices = @transform_3, window_bounds = array<i64: 1, 8, 16, 128>}]} {
    %c8_i32 = arith.constant 8 : i32
    %0 = arith.muli %arg1, %c8_i32 : i32
    %1 = tpu.assume_multiple %0, 8 : i32
    %c0 = arith.constant 0 : index
    %2 = arith.index_cast %1 : i32 to index
    %c0_0 = arith.constant 0 : index
    %c0_1 = arith.constant 0 : index
    %3 = vector.load %arg2[%c0, %2, %c0_0, %c0_1] : memref<1x18x16x12xbf16, #tpu.memory_space<vmem>>, vector<1x8x16x12xbf16>
    %4 = vector.shape_cast %3 : vector<1x8x16x12xbf16> to vector<8x16x12xbf16>
    %5 = vector.shape_cast %4 : vector<8x16x12xbf16> to vector<128x12xbf16>
    %c0_2 = arith.constant 0 : index
    %c0_3 = arith.constant 0 : index
    %c0_4 = arith.constant 0 : index
    %6 = vector.load %arg3[%c0_2, %c0_3, %c0_4] : memref<3x12x128xbf16, #tpu.memory_space<vmem>>, vector<1x12x128xbf16>
    %7 = vector.shape_cast %6 : vector<1x12x128xbf16> to vector<12x128xbf16>
    %cst = arith.constant dense<0.000000e+00> : vector<128x128xf32>
    %8 = tpu.matmul %5, %7, %cst {dimension_numbers = #tpu.dot_dimension_numbers<[1], [0], [0], [1], [0, 0, 1, 1], [], []>} : vector<128x12xbf16>, vector<12x128xbf16>, vector<128x128xf32> -> vector<128x128xf32>
    %c1_i32 = arith.constant 1 : i32
    %9 = arith.addi %1, %c1_i32 : i32
    %c0_5 = arith.constant 0 : index
    %10 = arith.index_cast %9 : i32 to index
    %c0_6 = arith.constant 0 : index
    %c0_7 = arith.constant 0 : index
    %11 = vector.load %arg2[%c0_5, %10, %c0_6, %c0_7] : memref<1x18x16x12xbf16, #tpu.memory_space<vmem>>, vector<1x8x16x12xbf16>
    %12 = vector.shape_cast %11 : vector<1x8x16x12xbf16> to vector<8x16x12xbf16>
    %13 = vector.shape_cast %12 : vector<8x16x12xbf16> to vector<128x12xbf16>
    %c1 = arith.constant 1 : index
    %c0_8 = arith.constant 0 : index
    %c0_9 = arith.constant 0 : index
    %14 = vector.load %arg3[%c1, %c0_8, %c0_9] : memref<3x12x128xbf16, #tpu.memory_space<vmem>>, vector<1x12x128xbf16>
    %15 = vector.shape_cast %14 : vector<1x12x128xbf16> to vector<12x128xbf16>
    %cst_10 = arith.constant dense<0.000000e+00> : vector<128x128xf32>
    %16 = tpu.matmul %13, %15, %cst_10 {dimension_numbers = #tpu.dot_dimension_numbers<[1], [0], [0], [1], [0, 0, 1, 1], [], []>} : vector<128x12xbf16>, vector<12x128xbf16>, vector<128x128xf32> -> vector<128x128xf32>
    %17 = arith.addf %8, %16 : vector<128x128xf32>
    %c2_i32 = arith.constant 2 : i32
    %18 = arith.addi %1, %c2_i32 : i32
    %c0_11 = arith.constant 0 : index
    %19 = arith.index_cast %18 : i32 to index
    %c0_12 = arith.constant 0 : index
    %c0_13 = arith.constant 0 : index
    %20 = vector.load %arg2[%c0_11, %19, %c0_12, %c0_13] : memref<1x18x16x12xbf16, #tpu.memory_space<vmem>>, vector<1x8x16x12xbf16>
    %21 = vector.shape_cast %20 : vector<1x8x16x12xbf16> to vector<8x16x12xbf16>
    %22 = vector.shape_cast %21 : vector<8x16x12xbf16> to vector<128x12xbf16>
    %c2 = arith.constant 2 : index
    %c0_14 = arith.constant 0 : index
    %c0_15 = arith.constant 0 : index
    %23 = vector.load %arg3[%c2, %c0_14, %c0_15] : memref<3x12x128xbf16, #tpu.memory_space<vmem>>, vector<1x12x128xbf16>
    %24 = vector.shape_cast %23 : vector<1x12x128xbf16> to vector<12x128xbf16>
    %cst_16 = arith.constant dense<0.000000e+00> : vector<128x128xf32>
    %25 = tpu.matmul %22, %24, %cst_16 {dimension_numbers = #tpu.dot_dimension_numbers<[1], [0], [0], [1], [0, 0, 1, 1], [], []>} : vector<128x12xbf16>, vector<12x128xbf16>, vector<128x128xf32> -> vector<128x128xf32>
    %26 = arith.addf %17, %25 : vector<128x128xf32>
    %c0_17 = arith.constant 0 : index
    %c0_18 = arith.constant 0 : index
    %27 = vector.load %arg4[%c0_17, %c0_18] : memref<1x128xf32, #tpu.memory_space<vmem>>, vector<1x128xf32>
    %28 = vector.broadcast %27 : vector<1x128xf32> to vector<128x128xf32>
    %29 = arith.addf %26, %28 : vector<128x128xf32>
    %cst_19 = arith.constant 0.000000e+00 : f32
    %30 = vector.broadcast %cst_19 : f32 to vector<128x128xf32>
    %31 = arith.maximumf %29, %30 : vector<128x128xf32>
    %32 = vector.shape_cast %31 : vector<128x128xf32> to vector<8x16x128xf32>
    %33 = arith.truncf %32 : vector<8x16x128xf32> to vector<8x16x128xbf16>
    %c0_20 = arith.constant 0 : index
    %c0_21 = arith.constant 0 : index
    %c0_22 = arith.constant 0 : index
    %c0_23 = arith.constant 0 : index
    %34 = vector.load %arg5[%c0_20, %c0_21, %c0_22, %c0_23] : memref<1x8x16x128xbf16, #tpu.memory_space<vmem>>, vector<1x8x16x128xbf16>
    %35 = vector.shape_cast %34 : vector<1x8x16x128xbf16> to vector<8x16x128xbf16>
    %36 = vector.shape_cast %33 : vector<8x16x128xbf16> to vector<1x8x16x128xbf16>
    tpu.vector_store %arg5[%c0_20, %c0_21, %c0_22, %c0_23], %36 {strides = array<i32>} : memref<1x8x16x128xbf16, #tpu.memory_space<vmem>>, vector<1x8x16x128xbf16>,
    return
  }
  func.func @transform_0(%arg0: i32, %arg1: i32) -> (i32, i32, i32, i32) {
    %c0_i32 = arith.constant 0 : i32
    %c0_i32_0 = arith.constant 0 : i32
    %c0_i32_1 = arith.constant 0 : i32
    %c0_i32_2 = arith.constant 0 : i32
    return %arg0, %c0_i32, %c0_i32_0, %c0_i32_1 : i32, i32, i32, i32
  }
  func.func @transform_1(%arg0: i32, %arg1: i32) -> (i32, i32, i32) {
    %c0_i32 = arith.constant 0 : i32
    %c0_i32_0 = arith.constant 0 : i32
    %c0_i32_1 = arith.constant 0 : i32
    %c0_i32_2 = arith.constant 0 : i32
    return %c0_i32, %c0_i32_0, %c0_i32_1 : i32, i32, i32
  }
  func.func @transform_2(%arg0: i32, %arg1: i32) -> (i32, i32) {
    %c0_i32 = arith.constant 0 : i32
    %c0_i32_0 = arith.constant 0 : i32
    %c0_i32_1 = arith.constant 0 : i32
    return %c0_i32, %c0_i32_0 : i32, i32
  }
  func.func @transform_3(%arg0: i32, %arg1: i32) -> (i32, i32, i32, i32) {
    %c0_i32 = arith.constant 0 : i32
    %c0_i32_0 = arith.constant 0 : i32
    %c0_i32_1 = arith.constant 0 : i32
    return %arg0, %arg1, %c0_i32, %c0_i32_0 : i32, i32, i32, i32
  }
}

</mosaic_0001>

<bundles_post_ra>
// kernel: tpu_custom_call.1
= control target key start
LH: loop header
LB: loop body
LE: loop exit
PB: predicated region body
PF: predicated region fallthrough
CT: control target
= control target key end

     0   :  { %8 = vsyncpa [#allocation3], 0  ;;  %s1773_s0 = inlined_call_operand.vmem [shape: bf16[2,18,16,12], index: 0, kind: input, shape index: {}]   ;;  %s1774_s1 = inlined_call_operand.vmem [shape: bf16[3,12,128], index: 1, kind: input, shape index: {}]   ;;  %s1775_s2 = inlined_call_operand.vmem [shape: f32[1,128], index: 2, kind: input, shape index: {}]   ;;  %s1776_s3 = inlined_call_operand.hbm [shape: bf16[2,16,16,128], index: 3, kind: output, shape index: {}]  }
   0x1   :  { %10 = vsyncpa [#allocation3 + $0x1], 0  ;;  %s1532_s12 = smov 0   ;;  %s1534_s13 = smov 0  }
   0x2   :  { %s1536_s14 = smov 0   ;;  %s1538_s15 = smov 0  }
   0x3   :  { %s1540_s16 = smov 0   ;;  %s1542_s17 = smov 0  }
   0x4   :  { %s1544_s18 = smov 0   ;;  %s1546_s19 = smov 0  }
   0x5 LB: > { %s1000_s20 = sadd.s32 4294967295, %s1507_s19   ;;  %s1001_s21 = sadd.s32 4294967294, %s1507_s19   ;;  %s1507_s19 = sphi %s1546_s19, %s16_s19   ;;  %s1503_s18 = sphi %s1544_s18, %s1785_s18   ;;  %s1499_s17 = sphi %s1542_s17, %s1784_s17   ;;  %s1495_s16 = sphi %s1540_s16, %s1783_s16   ;;  %s1491_s15 = sphi %s1538_s15, %s1782_s15   ;;  %s1487_s14 = sphi %s1536_s14, %s1781_s14   ;;  %s1483_s13 = sphi %s1534_s13, %s1780_s13   ;;  %s1479_s12 = sphi %s1532_s12, %s1779_s12  }
   0x6   : > { %s25_s22 = sadd.s32 1, %s1499_s17  ;;  %s28_s23 = sadd.s32 1, %s1503_s18 }
   0x7   : > { %p26_p0 = scmp.ge.s32.totalorder %s25_s22, 2  ;;  %p115_p1 = scmp.ne.s32.totalorder %s1487_s14, %s1483_s13 }
   0x8   : > { %p116_p2 = scmp.eq.s32.totalorder %s1000_s20, 3  ;;  %p121_p5 = scmp.ne.s32.totalorder %s1483_s13, %s1479_s12 }
   0x9   : > { %s1787_s22 = smov (%p26_p0, %s25_s22), 0  ;;  %s1789_s23 = smov (!%p26_p0, %s28_s23), %s1503_s18 }
   0xa   : > { %s101_s24 = ssub.s32 %s1499_s17, %s1787_s22  ;;  %p1583_p3 = por %p116_p2, %p115_p1 }
   0xb   : > { %p30_p4 = scmp.ge.s32.totalorder %s1789_s23, 2  ;;  %p122_p6 = scmp.eq.s32.totalorder %s1001_s21, 3 }
   0xc   : > { %p1004_p7 = scmp.ge.s32.totalorder %s1507_s19, 1  ;;  %p154_p9 = scmp.lt.s32.totalorder %s1507_s19, 5 }
   0xd   : > { %s1791_s23 = smov (%p30_p4, %s1789_s23), 0  ;;  %p1592_p8 = por %p122_p6, %p121_p5 }
   0xe   : > { %s100_s27 = ssub.s32 %s1503_s18, %s1791_s23  ;;  %s105_s28 = sadd.s32 1, %s1487_s14 }
   0xf   : > { %s102_s29 = sor.u32 %s101_s24, %s100_s27  ;;  %p155_p10 = pnand %p1004_p7, %p154_p9 }
  0x10   : > { %p103_p11 = scmp.eq.s32.totalorder %s102_s29, 0  ;;  %v1386_v0 = vld [vmem:[%s1774_s1 + $0x8] sm:$0x3f] (!%p155_p10)   ;;  %vm300_vm0 = vcmask (!%p155_p10), 1045504   ;;  %p178_p12 = scmp.lt.s32.totalorder (!%p155_p10), %s1495_s16, 1  ;;  %vm275_vm1 = vcmask (!%p155_p10), 97280  }
  0x11   : > { %158 = sbr.rel (%p155_p10) target bundleno = 310 (0x136), region = 32  ;;  %1308 = vmatprep.subr.msk.bf16.mxu1 (!%p155_p10), %vm300_vm0, %v1386_v0  ;;  %v1387_v1 = vld [vmem:[%s1774_s1] sm:$0x3f] (!%p155_p10)   ;;  %v302_v2 = vsel (!%p155_p10), %vm300_vm0, %v1386_v0, 0  ;;  %v1390_v4 = vld [vmem:[%s1774_s1 + $0x10] sm:$0x3f] (!%p155_p10)  }
  0x12   : > { %s1601_s30 = scalar_select %p103_p11, %s1487_s14, %s105_s28  }
  0x13   : > { %1221 = vmatpush3.bf16.msra.mxu1 (!%p155_p10), %v302_v2  ;;  %1309 = vmatprep.subr.msk.bf16.mxu0 (!%p155_p10), %vm300_vm0, %v1387_v1  ;;  %v471_v3 = vsel (!%p155_p10), %vm300_vm0, %v1387_v1, 0  ;;  %s1126_s20 = sshll.u32 (!%p155_p10), %s1491_s15, 6  ;;  %v663_v9 = vsel (!%p155_p10), %vm300_vm0, %v1390_v4, 0  ;;  %v1678_v39 = vld [vmem:[%s1775_s2] ss:$0 sm:$0xff] (!%p155_p10)  ;;  %s175_s5 = sand.u32 (!%p155_p10), 1, %s1483_s13  }
  0x14   : > { %1310 = vmatprep.subr.msk.bf16.mxu1 (!%p155_p10), %vm300_vm0, %v1387_v1  ;;  %1239 = vmatpush3.bf16.msra.mxu0 (!%p155_p10), %v471_v3  ;;  %s1005_s6 = sshll.u32 (!%p155_p10), %s175_s5, 6  ;;  %s1121_s9 = sshll.u32 (!%p155_p10), %s1495_s16, 5 }
  0x15   : > { %1311 = vmatprep.subr.msk.bf16.mxu0 (!%p155_p10), %vm300_vm0, %v1390_v4  ;;  %s1687_s7 = scalar_lea.vmem (!%p155_p10), [#allocation2], %s1005_s6  ;;  %s1721_s24 = scalar_lea.sflag (!%p155_p10), [#allocation3], %s175_s5 }
  0x18   : > { %s179_s8 = scalar_select %p178_p12, %s1495_s16, 1 }
  0x19   : > { %s914_s16 = sshll.u32 %s1687_s7, 4  ;;  %s1715_s16 = int_to_ptr.vmem [resolvable:$true] %s914_s16 }
  0x1a   : > { %s1312_s11 = smul.u32 144, %s179_s8  ;;  %s1145_s8 = sshll.u32 %s1491_s15, 4 }
  0x1b   : > { %s911_s10 = sadd.s32 %s1145_s8, %s1121_s9 }
  0x1c   : > { %s182_s27 = scalar_lea.vmem %s1773_s0, %s1312_s11  ;;  %s1122_s15 = sshll.u32 %s911_s10, 6 }
  0x1d   : > { %s1624_s28 = scalar_lea.vmem %s182_s27, %s1126_s20  ;;  %s1713_s21 = scalar_lea.hbm %s1776_s3, %s1122_s15 }
  0x1e   : > { %v1388_v5 = vld [vmem:[%s1624_s28 + $0x8] sm:$0xff]   ;;  %v1389_v6 = vld [vmem:[%s1624_s28] sm:$0xff]   ;;  %v1391_v7 = vld [vmem:[%s1624_s28 + $0x10] sm:$0xff]   ;;  %s1413_s27 = scalar_lea.vmem %s1715_s16, 1024 }
  0x1f   : > { %1222 = vmatprep.mubr.msk.bf16.mxu1 %vm275_vm1, %v1388_v5  ;;  %1240 = vmatprep.mubr.msk.bf16.mxu0 %vm275_vm1, %v1389_v6  ;;  %v1392_v8 = vld [vmem:[%s1624_s28 + $0x8] sm:$0xff]   ;;  %v1393_v10 = vld [vmem:[%s1624_s28 + $0x18] sm:$0xff]   ;;  %v1394_v11 = vld [vmem:[%s1624_s28 + $0x10] sm:$0xff]   ;;  %p1414_p13 = scmp.ne.s32.totalorder %s1715_s16, %s1413_s27 }
  0x20   : > { %1223 = vmatmul.mubr.msk.bf16.vlgmr.msra.gmra.mrb[0].mxu1 %vm275_vm1, %v1391_v7  ;;  %1241 = vmatmul.mubr.msk.bf16.vlgmr.msra.gmra.mrb[0].mxu0 %vm275_vm1, %v1392_v8  ;;  %v1395_v12 = vld [vmem:[%s1624_s28 + $0x20] sm:$0xff]   ;;  %v1396_v13 = vld [vmem:[%s1624_s28 + $0x18] sm:$0xff]   ;;  %v1397_v14 = vld [vmem:[%s1624_s28 + $0x28] sm:$0xff]  }
  0x21   : > { %1275 = vmatpush3.bf16.msra.mxu1 %v471_v3  ;;  %1257 = vmatpush3.bf16.msra.mxu0 %v663_v9  ;;  %v1398_v15 = vld [vmem:[%s1624_s28 + $0x10] sm:$0xff]   ;;  %v1400_v17 = vld [vmem:[%s1624_s28 + $0x18] sm:$0xff]   ;;  %v1402_v19 = vld [vmem:[%s1624_s28 + $0x20] sm:$0xff]   ;;  %p1415_p0 = pnand %p1414_p13, %p1583_p3 }
  0x22   : > { %1226 = vmatprep.mubr.msk.bf16.mxu1 %vm275_vm1, %v1393_v10  ;;  %1244 = vmatprep.mubr.msk.bf16.mxu0 %vm275_vm1, %v1394_v11  ;;  %v1399_v16 = vld [vmem:[%s1624_s28 + $0x30] sm:$0xff]   ;;  %v1401_v18 = vld [vmem:[%s1624_s28 + $0x38] sm:$0xff]   ;;  %v1403_v20 = vld [vmem:[%s1624_s28 + $0x40] sm:$0xff]  }
  0x23   : > { %v1404_v21 = vld [vmem:[%s1624_s28 + $0x28] sm:$0xff]   ;;  %v1405_v22 = vld [vmem:[%s1624_s28 + $0x20] sm:$0xff]   ;;  %v1406_v23 = vld [vmem:[%s1624_s28 + $0x30] sm:$0xff]   ;;  %p1416_p1 = pneg %p1415_p0 }
  0x24   : > { %v1407_v24 = vld [vmem:[%s1624_s28 + $0x28] sm:$0xff]   ;;  %v1408_v25 = vld [vmem:[%s1624_s28 + $0x38] sm:$0xff]   ;;  %v1409_v26 = vld [vmem:[%s1624_s28 + $0x30] sm:$0xff]  }
  0x25   : > { %v1410_v27 = vld [vmem:[%s1624_s28 + $0x40] sm:$0xff]   ;;  %v1411_v28 = vld [vmem:[%s1624_s28 + $0x38] sm:$0xff]   ;;  %v1412_v29 = vld [vmem:[%s1624_s28 + $0x48] sm:$0xff]   ;;  %s1509_s28 = smov [#allocation2]  }
  0x26   : > { %s1417_s29 = sshll.u32 %s1509_s28, 4  ;;  %s1418_s29 = int_to_ptr.vmem [resolvable:$false] %s1417_s29 }
  0x27   : > { %s1419_s4 = scalar_lea.vmem %s1418_s29, 2048  ;;  %p1420_p2 = scmp.lt.s32.totalorder %s1715_s16, %s1418_s29 }
  0x28   : > { %1227 = vmatmul.mubr.msk.bf16.gmra.mrb[4].mxu1 %vm275_vm1, %v1395_v12  ;;  %1245 = vmatmul.mubr.msk.bf16.gmra.mrb[4].mxu0 %vm275_vm1, %v1396_v13  ;;  %p1421_p4 = scmp.lt.s32.totalorder %s1419_s4, %s1413_s27 }
  0x29   : > { %1230 = vmatprep.mubr.msk.bf16.mxu1 %vm275_vm1, %v1397_v14  ;;  %1258 = vmatprep.mubr.msk.bf16.mxu0 %vm275_vm1, %v1398_v15 }
  0x2a   : > { %p1422_p5 = por %p1421_p4, %p1420_p2 }
  0x2c   : > { %p1423_p6 = pnand %p1422_p5, %p1416_p1 }
  0x30   : > { %1231 = vmatmul.mubr.msk.bf16.gmra.mrb[8].mxu1 %vm275_vm1, %v1399_v16  ;;  %1259 = vmatmul.mubr.msk.bf16.vlgmr.msra.gmra.mrb[0].mxu0 %vm275_vm1, %v1400_v17 }
  0x31   : > { %1234 = vmatprep.mubr.msk.bf16.mxu1 %vm275_vm1, %v1401_v18  ;;  %1262 = vmatprep.mubr.msk.bf16.mxu0 %vm275_vm1, %v1402_v19 }
  0x38   : > { %1235 = vmatmul.mubr.msk.bf16.gmra.mrb[12].mxu1 %vm275_vm1, %v1403_v20  ;;  %1263 = vmatmul.mubr.msk.bf16.gmra.mrb[4].mxu0 %vm275_vm1, %v1404_v21 }
  0x39   : > { %1248 = vmatprep.mubr.msk.bf16.mxu1 %vm275_vm1, %v1405_v22  ;;  %1266 = vmatprep.mubr.msk.bf16.mxu0 %vm275_vm1, %v1406_v23 }
  0x40   : > { %1249 = vmatmul.mubr.msk.bf16.vlgmr.msra.gmra.mrb[8].mxu1 %vm275_vm1, %v1407_v24  ;;  %1267 = vmatmul.mubr.msk.bf16.gmra.mrb[8].mxu0 %vm275_vm1, %v1408_v25 }
  0x41   : > { %1252 = vmatprep.mubr.msk.bf16.mxu1 %vm275_vm1, %v1409_v26  ;;  %1270 = vmatprep.mubr.msk.bf16.mxu0 %vm275_vm1, %v1410_v27 }
  0x48   : > { %1253 = vmatmul.mubr.msk.bf16.gmra.mrb[12].mxu1 %vm275_vm1, %v1411_v28  ;;  %1271 = vmatmul.mubr.msk.bf16.gmra.mrb[12].mxu0 %vm275_vm1, %v1412_v29 }
  0xf3   : > { %v1224_v30 = vpop.f32.mrb[0].mxu1 }
  0xf4   : > { %v338_v31 = vpop.f32.mrb[1].mxu1 }
  0xf5   : > { %v1225_v32 = vpop.f32.mrb[2].mxu1 }
  0xf6   : > { %v341_v33 = vpop.f32.mrb[3].mxu1 }
  0xfb   : > { %v1228_v34 = vpop.f32.mrb[4].mxu1 }
  0xfc   : > { %v354_v35 = vpop.f32.mrb[5].mxu1 }
  0xfd   : > { %v1229_v36 = vpop.f32.mrb[6].mxu1 }
  0xfe   : > { %v357_v37 = vpop.f32.mrb[7].mxu1 }
 0x103   : > { %v1260_v38 = vpop.f32.mrb[0].mxu0 }
 0x104   : > { %v1276_v40 = vadd.f32 %v1260_v38, %v1224_v30  ;;  %v699_v41 = vpop.f32.mrb[1].mxu0 }
 0x105   : > { %v1277_v42 = vadd.f32 %v699_v41, %v338_v31  ;;  %v1261_v43 = vpop.f32.mrb[2].mxu0 }
 0x106   : > { %v787_v44 = vadd.f32 %v1276_v40, %v1678_v39  ;;  %v1278_v45 = vadd.f32 %v1261_v43, %v1225_v32  ;;  %v702_v46 = vpop.f32.mrb[3].mxu0 }
 0x107   : > { %v785_v47 = vadd.f32 %v1277_v42, %v1678_v39  ;;  %v1279_v48 = vadd.f32 %v702_v46, %v341_v33 }
 0x108   : > { %v788_v49 = vadd.f32 %v1278_v45, %v1678_v39  ;;  %v803_v51 = vmax.f32 %v787_v44, 0.0 }
 0x109   : > { %v786_v50 = vadd.f32 %v1279_v48, %v1678_v39  ;;  %v801_v53 = vmax.f32 %v785_v47, 0.0 }
 0x10a   : > { %v804_v52 = vmax.f32 %v788_v49, 0.0 }
 0x10b   : > { %v802_v54 = vmax.f32 %v786_v50, 0.0  ;;  %v1264_v55 = vpop.f32.mrb[4].mxu0 }
 0x10c   : > { %v1154_v56 = vpack.c.bf16 %v804_v52, %v803_v51  ;;  %v1280_v57 = vadd.f32 %v1264_v55, %v1228_v34  ;;  %v715_v58 = vpop.f32.mrb[5].mxu0 }
 0x10d   : > { %v1149_v59 = vpack.c.bf16 %v802_v54, %v801_v53  ;;  %v1281_v60 = vadd.f32 %v715_v58, %v354_v35  ;;  %v1265_v61 = vpop.f32.mrb[6].mxu0 }
 0x10e   : > { %1186 = vst [vmem:[%s1687_s7 + $0x8] sm:$0xff] %v1154_v56   ;;  %v791_v62 = vadd.f32 %v1280_v57, %v1678_v39  ;;  %v1282_v63 = vadd.f32 %v1265_v61, %v1229_v36  ;;  %v718_v0 = vpop.f32.mrb[7].mxu0 }
 0x10f   : > { %1150 = vst [vmem:[%s1687_s7] sm:$0xff] %v1149_v59   ;;  %v789_v1 = vadd.f32 %v1281_v60, %v1678_v39  ;;  %v1283_v2 = vadd.f32 %v718_v0, %v357_v37 }
 0x110   : > { %v792_v3 = vadd.f32 %v1282_v63, %v1678_v39  ;;  %v807_v5 = vmax.f32 %v791_v62, 0.0 }
 0x111   : > { %v790_v4 = vadd.f32 %v1283_v2, %v1678_v39  ;;  %v805_v8 = vmax.f32 %v789_v1, 0.0 }
 0x112   : > { %v808_v6 = vmax.f32 %v792_v3, 0.0 }
 0x113   : > { %v1250_v7 = vpop.f32.mrb[8].mxu1  ;;  %v806_v9 = vmax.f32 %v790_v4, 0.0  ;;  %v1268_v10 = vpop.f32.mrb[8].mxu0 }
 0x114   : > { %v539_v11 = vpop.f32.mrb[9].mxu1  ;;  %v1164_v12 = vpack.c.bf16 %v808_v6, %v807_v5  ;;  %v1284_v13 = vadd.f32 %v1268_v10, %v1250_v7  ;;  %v731_v14 = vpop.f32.mrb[9].mxu0 }
 0x115   : > { %v1251_v15 = vpop.f32.mrb[10].mxu1  ;;  %v1159_v16 = vpack.c.bf16 %v806_v9, %v805_v8  ;;  %v1285_v17 = vadd.f32 %v731_v14, %v539_v11  ;;  %v1269_v18 = vpop.f32.mrb[10].mxu0 }
 0x116   : > { %v542_v19 = vpop.f32.mrb[11].mxu1  ;;  %1188 = vst [vmem:[%s1687_s7 + $0x18] sm:$0xff] %v1164_v12   ;;  %v795_v20 = vadd.f32 %v1284_v13, %v1678_v39  ;;  %v1286_v21 = vadd.f32 %v1269_v18, %v1251_v15  ;;  %v734_v22 = vpop.f32.mrb[11].mxu0 }
 0x117   : > { %1187 = vst [vmem:[%s1687_s7 + $0x10] sm:$0xff] %v1159_v16   ;;  %v793_v23 = vadd.f32 %v1285_v17, %v1678_v39  ;;  %v1287_v24 = vadd.f32 %v734_v22, %v542_v19 }
 0x118   : > { %v796_v25 = vadd.f32 %v1286_v21, %v1678_v39  ;;  %v811_v27 = vmax.f32 %v795_v20, 0.0 }
 0x119   : > { %v794_v26 = vadd.f32 %v1287_v24, %v1678_v39  ;;  %v809_v30 = vmax.f32 %v793_v23, 0.0 }
 0x11a   : > { %v812_v28 = vmax.f32 %v796_v25, 0.0 }
 0x11b   : > { %v1254_v29 = vpop.f32.mrb[12].mxu1  ;;  %v810_v31 = vmax.f32 %v794_v26, 0.0  ;;  %v1272_v32 = vpop.f32.mrb[12].mxu0 }
 0x11c   : > { %v555_v33 = vpop.f32.mrb[13].mxu1  ;;  %v1174_v34 = vpack.c.bf16 %v812_v28, %v811_v27  ;;  %v1288_v35 = vadd.f32 %v1272_v32, %v1254_v29  ;;  %v747_v36 = vpop.f32.mrb[13].mxu0 }
 0x11d   : > { %v1255_v37 = vpop.f32.mrb[14].mxu1  ;;  %v1169_v38 = vpack.c.bf16 %v810_v31, %v809_v30  ;;  %v1289_v40 = vadd.f32 %v747_v36, %v555_v33  ;;  %v1273_v41 = vpop.f32.mrb[14].mxu0 }
 0x11e   : > { %v558_v42 = vpop.f32.mrb[15].mxu1  ;;  %1190 = vst [vmem:[%s1687_s7 + $0x28] sm:$0xff] %v1174_v34   ;;  %v799_v43 = vadd.f32 %v1288_v35, %v1678_v39  ;;  %v1290_v44 = vadd.f32 %v1273_v41, %v1255_v37  ;;  %v750_v45 = vpop.f32.mrb[15].mxu0 }
 0x11f   : > { %1189 = vst [vmem:[%s1687_s7 + $0x20] sm:$0xff] %v1169_v38   ;;  %v797_v46 = vadd.f32 %v1289_v40, %v1678_v39  ;;  %v1291_v47 = vadd.f32 %v750_v45, %v558_v42 }
 0x120   : > { %v800_v48 = vadd.f32 %v1290_v44, %v1678_v39  ;;  %v815_v50 = vmax.f32 %v799_v43, 0.0 }
 0x121   : > { %v798_v49 = vadd.f32 %v1291_v47, %v1678_v39  ;;  %v813_v52 = vmax.f32 %v797_v46, 0.0 }
 0x122   : > { %v816_v51 = vmax.f32 %v800_v48, 0.0 }
 0x123   : > { %v814_v53 = vmax.f32 %v798_v49, 0.0 }
 0x124   : > { %v1184_v54 = vpack.c.bf16 %v816_v51, %v815_v50 }
 0x125   : > { %v1179_v55 = vpack.c.bf16 %v814_v53, %v813_v52 }
 0x126   : > { %1192 = vst [vmem:[%s1687_s7 + $0x38] sm:$0xff] %v1184_v54  }
 0x127   : > { %1191 = vst [vmem:[%s1687_s7 + $0x30] sm:$0xff] %v1179_v55  }
 0x128   : > { %1426 = shalt.err (!%p1423_p6)
}
 0x129   : > { %s1427_s5 = scalar_lea.hbm %s1713_s21, 1024  ;;  %s1431_s8 = scalar_lea.hbm %s1776_s3, 4096 }
 0x12a   : > { %p1428_p7 = scmp.ne.s32.totalorder %s1713_s21, %s1427_s5  ;;  %p1432_p11 = scmp.lt.u32.totalorder %s1713_s21, %s1776_s3 }
 0x12b   : > { %p1433_p12 = scmp.lt.u32.totalorder %s1431_s8, %s1427_s5  ;;  %p1435_p0 = scmp.lt.u32.totalorder %s1427_s5, %s1713_s21 }
 0x12c   : > { %p1429_p9 = pnand %p1428_p7, %p1583_p3 }
 0x12d   : > { %p1434_p13 = por %p1433_p12, %p1432_p11 }
 0x12e   : > { %p1430_p10 = pneg %p1429_p9 }
 0x12f   : > { %p1436_p1 = por %p1435_p0, %p1434_p13 }
 0x131   : > { %p1437_p2 = pnand %p1436_p1, %p1430_p10 }
 0x133   : > { %1440 = shalt.err (!%p1437_p2)
}
 0x134   : > { %s1510_s15 = smov 64   ;;  %s1511_s11 = smov 4  }
 0x135   : > { %1313 = dma.vmem_to_hbm [thread:$0]  (%p1583_p3), %s1715_s16, 1024, %s1713_s21, %s1721_s24, %s1510_s15, %s1510_s15, %s1511_s11  }
 0x136 PF: > { %p1319_p4 = scmp.ge.s32.totalorder %s1507_s19, 2  ;;  %s929_s20 = sand.u32 1, %s1479_s12  }
 0x137   : > { %s930_s27 = scalar_lea.sflag [#allocation3], %s929_s20 }
 0x138   : > { %p1316_p5 = pnand %p1319_p4, %p1592_p8 }
 0x13a   : > { %1474 = dma.done.wait (!%p1316_p5), %s930_s27, 1024  }
 0x13b   : > { %1476 = vsyncadd (!%p1316_p5), %s930_s27, 4294966272  ;;  %s16_s19 = sadd.s32 1, %s1507_s19   ;;  %s1779_s12 = smov %s1483_s13 }
 0x13c   : > { %p13_p6 = scmp.ge.s32.totalorder %s16_s19, 6   ;;  %s1780_s13 = smov %s1487_s14 }
 0x13d   : > { %s1781_s14 = smov %s1601_s30  ;;  %s1782_s15 = smov %s1499_s17 }
 0x13e   : > { %s1783_s16 = smov %s1503_s18  ;;  %s1784_s17 = smov %s1787_s22 }
 0x13f   : > { %s1785_s18 = smov %s1791_s23  ;;  %15 = sbr.rel (!%p13_p6) target bundleno = 5 (0x5), region = 72 }
 0x146   :  { %935 = vsyncpa [#allocation3], 1 }
 0x147   :  { %937 = vsyncpa [#allocation3 + $0x1], 1 }

</bundles_post_ra>
